<compile_context>
chip_gen: v7x
topology: tpu7x:2x2x1
jax: 0.10.0
libtpu: 0.0.40
codegen_flags: <defaults>
</compile_context>

<pallas_src>
import functools

import jax
import jax.numpy as jnp
from jax.experimental import pallas as pl
from jax.experimental.pallas import tpu as pltpu

LN_EPS = 1e-5  # torch.nn.LayerNorm default eps


def _round_up(n, m):
    return ((n + m - 1) // m) * m


def _pfm_kernel(state_dim, max_sigma, min_sigma,
                x_ref, w_fc_ref, b_fc_ref, g_ref, beta_ref,
                w_head_ref, b_head_ref, out_ref):
    """Fused fc -> LayerNorm -> ReLU -> single packed (mu|sigma) head."""
    # fc: bf16 MXU matmul, f32 accumulate.  [TB, Din] @ [Din, H] + [1, H]
    x = x_ref[...].astype(jnp.bfloat16)
    h = jnp.dot(x, w_fc_ref[...], preferred_element_type=jnp.float32)
    h = h + b_fc_ref[...]

    # LayerNorm over the feature axis (f32; XLU reduce + EUP rsqrt).
    mean = jnp.mean(h, axis=-1, keepdims=True)
    centered = h - mean
    var = jnp.mean(centered * centered, axis=-1, keepdims=True)
    h = centered * jax.lax.rsqrt(var + LN_EPS) * g_ref[...] + beta_ref[...]

    # ReLU
    h = jnp.maximum(h, 0.0)

    # Fused head: [TB, H] @ [H, Nout] + [1, Nout]   (Nout = round_up(2*S, 128))
    z = jnp.dot(h.astype(jnp.bfloat16), w_head_ref[...],
                preferred_element_type=jnp.float32)
    z = z + b_head_ref[...]

    # Lanes [0, S)        -> mu (identity)
    # Lanes [S, 2S)       -> sigma = min + (max - min) * sigmoid(.)
    # Lanes [2S, Nout)    -> zero padding (left as-is, sliced off outside)
    lane = jax.lax.broadcasted_iota(jnp.int32, z.shape, 1)
    is_sigma = (lane >= state_dim) & (lane < 2 * state_dim)
    sig = min_sigma + (max_sigma - min_sigma) * jax.nn.sigmoid(z)
    out_ref[...] = jnp.where(is_sigma, sig, z).astype(out_ref.dtype)


def pack_params(raw_params):
    """Pack raw f32 params into the kernel layout (bf16 weights, fused head)."""
    w_fc, b_fc, gamma, beta, w_mu, b_mu, w_sig, b_sig = raw_params
    H = w_fc.shape[1]
    S = w_mu.shape[1]
    n_out = _round_up(2 * S, 128)

    w_head = jnp.concatenate([w_mu, w_sig], axis=1)          # [H, 2S]
    b_head = jnp.concatenate([b_mu, b_sig], axis=1)          # [1, 2S]
    if n_out > 2 * S:
        w_head = jnp.pad(w_head, ((0, 0), (0, n_out - 2 * S)))
        b_head = jnp.pad(b_head, ((0, 0), (0, n_out - 2 * S)))

    return (w_fc.astype(jnp.bfloat16),
            b_fc.astype(jnp.float32),
            gamma.astype(jnp.float32),
            beta.astype(jnp.float32),
            w_head.astype(jnp.bfloat16),
            b_head.astype(jnp.float32),
            S)


def probabilistic_forward_model(x, packed_params, *, max_sigma=10.0,
                                min_sigma=1e-4):
    """x: [B, Din] float32.  Returns (mu, sigma), each [B, state_dim] f32."""
    w_fc, b_fc, gamma, beta, w_head, b_head, S = packed_params
    B, Din = x.shape
    H = w_fc.shape[1]
    n_out = w_head.shape[1]

    # Batch tile: full batch if small, else 512-row tiles (multiple of 8).
    TB = B if B <= 512 else 512
    grid = (pl.cdiv(B, TB),)

    const = lambda shape: pl.BlockSpec(shape, lambda i: (0,) * len(shape))

    kernel = functools.partial(_pfm_kernel, S, float(max_sigma),
                               float(min_sigma))

    out = pl.pallas_call(
        kernel,
        out_shape=jax.ShapeDtypeStruct((B, n_out), jnp.float32),
        grid=grid,
        in_specs=[
            pl.BlockSpec((TB, Din), lambda i: (i, 0)),   # x (batch-tiled)
            const((Din, H)),                             # w_fc (bf16)
            const((1, H)),                               # b_fc
            const((1, H)),                               # ln gamma
            const((1, H)),                               # ln beta
            const((H, n_out)),                           # fused head W (bf16)
            const((1, n_out)),                           # fused head b
        ],
        out_specs=pl.BlockSpec((TB, n_out), lambda i: (i, 0)),
        compiler_params=pltpu.CompilerParams(
            dimension_semantics=("parallel",)),
    )(x, w_fc, b_fc, gamma, beta, w_head, b_head)

    mu = out[:, :S]
    sigma = out[:, S:2 * S]
    return mu, sigma


def init_params(key, state_dim, task_embedding_dim, action_dim, layer_width):
    """Init mimicking torch.nn.Linear defaults (U[-1/sqrt(fan_in), +])."""
    in_dim = state_dim + task_embedding_dim + action_dim
    ks = jax.random.split(key, 6)

    def linear(kw, kb, fan_in, fan_out):
        bound = 1.0 / jnp.sqrt(float(fan_in))
        w = jax.random.uniform(kw, (fan_in, fan_out), jnp.float32, -bound, bound)
        b = jax.random.uniform(kb, (1, fan_out), jnp.float32, -bound, bound)
        return w, b

    w_fc, b_fc = linear(ks[0], ks[1], in_dim, layer_width)
    gamma = jnp.ones((1, layer_width), jnp.float32)   # LayerNorm weight
    beta = jnp.zeros((1, layer_width), jnp.float32)   # LayerNorm bias
    w_mu, b_mu = linear(ks[2], ks[3], layer_width, state_dim)
    w_sig, b_sig = linear(ks[4], ks[5], layer_width, state_dim)
    return (w_fc, b_fc, gamma, beta, w_mu, b_mu, w_sig, b_sig)


def _reference(x, raw_params, max_sigma=10.0, min_sigma=1e-4):
    """Pure-JAX reference matching the PyTorch forward (same bf16 matmul path)."""
    w_fc, b_fc, gamma, beta, w_mu, b_mu, w_sig, b_sig = raw_params
    xb = x.astype(jnp.bfloat16)
    h = jnp.dot(xb, w_fc.astype(jnp.bfloat16),
                preferred_element_type=jnp.float32) + b_fc
    mean = jnp.mean(h, axis=-1, keepdims=True)
    var = jnp.mean((h - mean) ** 2, axis=-1, keepdims=True)
    h = (h - mean) * jax.lax.rsqrt(var + LN_EPS) * gamma + beta
    h = jax.nn.relu(h).astype(jnp.bfloat16)
    mu = jnp.dot(h, w_mu.astype(jnp.bfloat16),
                 preferred_element_type=jnp.float32) + b_mu
    s = jnp.dot(h, w_sig.astype(jnp.bfloat16),
                preferred_element_type=jnp.float32) + b_sig
    sigma = min_sigma + (max_sigma - min_sigma) * jax.nn.sigmoid(s)
    return mu, sigma


if __name__ == "__main__":
    # Small, forward-consistent shapes.
    state_dim = 32
    task_embedding_dim = 16
    action_dim = 16          # action_shape = [16]
    layer_width = 128
    batch = 8
    in_dim = state_dim + task_embedding_dim + action_dim  # 64

    key = jax.random.PRNGKey(0)
    k_params, k_x = jax.random.split(key)
    raw_params = init_params(k_params, state_dim, task_embedding_dim,
                             action_dim, layer_width)
    packed = pack_params(raw_params)
    x = jax.random.normal(k_x, (batch, in_dim), jnp.float32)

    mu, sigma = probabilistic_forward_model(x, packed)
    jax.block_until_ready((mu, sigma))

    mu_ref, sigma_ref = _reference(x, raw_params)
    assert mu.shape == (batch, state_dim) and sigma.shape == (batch, state_dim)
    assert jnp.allclose(mu, mu_ref, atol=1e-2, rtol=1e-2)
    assert jnp.allclose(sigma, sigma_ref, atol=1e-2, rtol=1e-2)
    assert bool(jnp.all(sigma >= 1e-4)) and bool(jnp.all(sigma <= 10.0))

    # TODO(synk): sample_prediction (mu + sigma * randn) is a trivial elementwise
    # op on the outputs; left to the caller / XLA rather than the kernel.
    print("KERNEL_OK")
</pallas_src>

<mosaic_0001>
module attributes {stable_mosaic.version = 11 : i64} {
  func.func @_pfm_kernel(%arg0: i32, %arg1: memref<8x64xf32, #tpu.memory_space<vmem>>, %arg2: memref<64x128xbf16, #tpu.memory_space<vmem>>, %arg3: memref<1x128xf32, #tpu.memory_space<vmem>>, %arg4: memref<1x128xf32, #tpu.memory_space<vmem>>, %arg5: memref<1x128xf32, #tpu.memory_space<vmem>>, %arg6: memref<128x128xbf16, #tpu.memory_space<vmem>>, %arg7: memref<1x128xf32, #tpu.memory_space<vmem>>, %arg8: memref<8x128xf32, #tpu.memory_space<vmem>>) attributes {dimension_semantics = [#tpu.dimension_semantics<parallel>], iteration_bounds = array<i64: 1>, scalar_prefetch = 0 : i64, scratch_operands = 0 : i64, tpu.core_type = #tpu.core_type<tc>, window_params = [{transform_indices = @transform_0, window_bounds = array<i64: 8, 64>}, {pipeline_mode = #tpu.pipeline_mode<synchronous>, transform_indices = @transform_1, window_bounds = array<i64: 64, 128>}, {pipeline_mode = #tpu.pipeline_mode<synchronous>, transform_indices = @transform_2, window_bounds = array<i64: 1, 128>}, {pipeline_mode = #tpu.pipeline_mode<synchronous>, transform_indices = @transform_3, window_bounds = array<i64: 1, 128>}, {pipeline_mode = #tpu.pipeline_mode<synchronous>, transform_indices = @transform_4, window_bounds = array<i64: 1, 128>}, {pipeline_mode = #tpu.pipeline_mode<synchronous>, transform_indices = @transform_5, window_bounds = array<i64: 128, 128>}, {pipeline_mode = #tpu.pipeline_mode<synchronous>, transform_indices = @transform_6, window_bounds = array<i64: 1, 128>}, {transform_indices = @transform_7, window_bounds = array<i64: 8, 128>}]} {
    %c0 = arith.constant 0 : index
    %c0_0 = arith.constant 0 : index
    %0 = vector.load %arg1[%c0, %c0_0] : memref<8x64xf32, #tpu.memory_space<vmem>>, vector<8x64xf32>
    %1 = arith.truncf %0 : vector<8x64xf32> to vector<8x64xbf16>
    %c0_1 = arith.constant 0 : index
    %c0_2 = arith.constant 0 : index
    %2 = vector.load %arg2[%c0_1, %c0_2] : memref<64x128xbf16, #tpu.memory_space<vmem>>, vector<64x128xbf16>
    %cst = arith.constant dense<0.000000e+00> : vector<8x128xf32>
    %3 = tpu.matmul %1, %2, %cst {dimension_numbers = #tpu.dot_dimension_numbers<[1], [0], [0], [1], [0, 0, 1, 1], [], []>} : vector<8x64xbf16>, vector<64x128xbf16>, vector<8x128xf32> -> vector<8x128xf32>
    %c0_3 = arith.constant 0 : index
    %c0_4 = arith.constant 0 : index
    %4 = vector.load %arg3[%c0_3, %c0_4] : memref<1x128xf32, #tpu.memory_space<vmem>>, vector<1x128xf32>
    %5 = vector.broadcast %4 : vector<1x128xf32> to vector<8x128xf32>
    %6 = arith.addf %3, %5 : vector<8x128xf32>
    %cst_5 = arith.constant dense<0.000000e+00> : vector<8xf32>
    %7 = vector.multi_reduction <add>, %6, %cst_5 [1] : vector<8x128xf32> to vector<8xf32>
    %8 = vector.shape_cast %7 : vector<8xf32> to vector<8x1xf32>
    %cst_6 = arith.constant 1.280000e+02 : f32
    %9 = vector.broadcast %cst_6 : f32 to vector<8x1xf32>
    %10 = arith.divf %8, %9 : vector<8x1xf32>
    %11 = vector.broadcast %10 : vector<8x1xf32> to vector<8x128xf32>
    %12 = arith.subf %6, %11 : vector<8x128xf32>
    %13 = arith.mulf %12, %12 : vector<8x128xf32>
    %cst_7 = arith.constant dense<0.000000e+00> : vector<8xf32>
    %14 = vector.multi_reduction <add>, %13, %cst_7 [1] : vector<8x128xf32> to vector<8xf32>
    %15 = vector.shape_cast %14 : vector<8xf32> to vector<8x1xf32>
    %cst_8 = arith.constant 1.280000e+02 : f32
    %16 = vector.broadcast %cst_8 : f32 to vector<8x1xf32>
    %17 = arith.divf %15, %16 : vector<8x1xf32>
    %cst_9 = arith.constant 9.99999974E-6 : f32
    %18 = vector.broadcast %cst_9 : f32 to vector<8x1xf32>
    %19 = arith.addf %17, %18 : vector<8x1xf32>
    %20 = math.rsqrt %19 : vector<8x1xf32>
    %21 = vector.broadcast %20 : vector<8x1xf32> to vector<8x128xf32>
    %22 = arith.mulf %12, %21 : vector<8x128xf32>
    %c0_10 = arith.constant 0 : index
    %c0_11 = arith.constant 0 : index
    %23 = vector.load %arg4[%c0_10, %c0_11] : memref<1x128xf32, #tpu.memory_space<vmem>>, vector<1x128xf32>
    %24 = vector.broadcast %23 : vector<1x128xf32> to vector<8x128xf32>
    %25 = arith.mulf %22, %24 : vector<8x128xf32>
    %c0_12 = arith.constant 0 : index
    %c0_13 = arith.constant 0 : index
    %26 = vector.load %arg5[%c0_12, %c0_13] : memref<1x128xf32, #tpu.memory_space<vmem>>, vector<1x128xf32>
    %27 = vector.broadcast %26 : vector<1x128xf32> to vector<8x128xf32>
    %28 = arith.addf %25, %27 : vector<8x128xf32>
    %cst_14 = arith.constant 0.000000e+00 : f32
    %29 = vector.broadcast %cst_14 : f32 to vector<8x128xf32>
    %30 = arith.maximumf %28, %29 : vector<8x128xf32>
    %31 = arith.truncf %30 : vector<8x128xf32> to vector<8x128xbf16>
    %c0_15 = arith.constant 0 : index
    %c0_16 = arith.constant 0 : index
    %32 = vector.load %arg6[%c0_15, %c0_16] : memref<128x128xbf16, #tpu.memory_space<vmem>>, vector<128x128xbf16>
    %cst_17 = arith.constant dense<0.000000e+00> : vector<8x128xf32>
    %33 = tpu.matmul %31, %32, %cst_17 {dimension_numbers = #tpu.dot_dimension_numbers<[1], [0], [0], [1], [0, 0, 1, 1], [], []>} : vector<8x128xbf16>, vector<128x128xbf16>, vector<8x128xf32> -> vector<8x128xf32>
    %c0_18 = arith.constant 0 : index
    %c0_19 = arith.constant 0 : index
    %34 = vector.load %arg7[%c0_18, %c0_19] : memref<1x128xf32, #tpu.memory_space<vmem>>, vector<1x128xf32>
    %35 = vector.broadcast %34 : vector<1x128xf32> to vector<8x128xf32>
    %36 = arith.addf %33, %35 : vector<8x128xf32>
    %37 = tpu.iota {dimensions = array<i32: 1>} : vector<8x128xi32>
    %c32_i32 = arith.constant 32 : i32
    %38 = vector.broadcast %c32_i32 : i32 to vector<8x128xi32>
    %39 = arith.cmpi sge, %37, %38 : vector<8x128xi32>
    %c64_i32 = arith.constant 64 : i32
    %40 = vector.broadcast %c64_i32 : i32 to vector<8x128xi32>
    %41 = arith.cmpi slt, %37, %40 : vector<8x128xi32>
    %42 = arith.andi %39, %41 : vector<8x128xi1>
    %43 = arith.negf %36 : vector<8x128xf32>
    %44 = math.exp %43 : vector<8x128xf32>
    %cst_20 = arith.constant 1.000000e+00 : f32
    %45 = vector.broadcast %cst_20 : f32 to vector<8x128xf32>
    %46 = arith.addf %45, %44 : vector<8x128xf32>
    %47 = arith.divf %45, %46 : vector<8x128xf32>
    %cst_21 = arith.constant 9.99989986 : f32
    %48 = vector.broadcast %cst_21 : f32 to vector<8x128xf32>
    %49 = arith.mulf %48, %47 : vector<8x128xf32>
    %cst_22 = arith.constant 9.99999974E-5 : f32
    %50 = vector.broadcast %cst_22 : f32 to vector<8x128xf32>
    %51 = arith.addf %50, %49 : vector<8x128xf32>
    %52 = arith.select %42, %51, %36 : vector<8x128xi1>, vector<8x128xf32>
    %c0_23 = arith.constant 0 : index
    %c0_24 = arith.constant 0 : index
    %53 = vector.load %arg8[%c0_23, %c0_24] : memref<8x128xf32, #tpu.memory_space<vmem>>, vector<8x128xf32>
    tpu.vector_store %arg8[%c0_23, %c0_24], %52 {strides = array<i32>} : memref<8x128xf32, #tpu.memory_space<vmem>>, vector<8x128xf32>,
    return
  }
  func.func @transform_0(%arg0: i32) -> (i32, i32) {
    %c0_i32 = arith.constant 0 : i32
    %c0_i32_0 = arith.constant 0 : i32
    return %arg0, %c0_i32 : i32, i32
  }
  func.func @transform_1(%arg0: i32) -> (i32, i32) {
    %c0_i32 = arith.constant 0 : i32
    %c0_i32_0 = arith.constant 0 : i32
    %c0_i32_1 = arith.constant 0 : i32
    return %c0_i32, %c0_i32_0 : i32, i32
  }
  func.func @transform_2(%arg0: i32) -> (i32, i32) {
    %c0_i32 = arith.constant 0 : i32
    %c0_i32_0 = arith.constant 0 : i32
    %c0_i32_1 = arith.constant 0 : i32
    return %c0_i32, %c0_i32_0 : i32, i32
  }
  func.func @transform_3(%arg0: i32) -> (i32, i32) {
    %c0_i32 = arith.constant 0 : i32
    %c0_i32_0 = arith.constant 0 : i32
    %c0_i32_1 = arith.constant 0 : i32
    return %c0_i32, %c0_i32_0 : i32, i32
  }
  func.func @transform_4(%arg0: i32) -> (i32, i32) {
    %c0_i32 = arith.constant 0 : i32
    %c0_i32_0 = arith.constant 0 : i32
    %c0_i32_1 = arith.constant 0 : i32
    return %c0_i32, %c0_i32_0 : i32, i32
  }
  func.func @transform_5(%arg0: i32) -> (i32, i32) {
    %c0_i32 = arith.constant 0 : i32
    %c0_i32_0 = arith.constant 0 : i32
    %c0_i32_1 = arith.constant 0 : i32
    return %c0_i32, %c0_i32_0 : i32, i32
  }
  func.func @transform_6(%arg0: i32) -> (i32, i32) {
    %c0_i32 = arith.constant 0 : i32
    %c0_i32_0 = arith.constant 0 : i32
    %c0_i32_1 = arith.constant 0 : i32
    return %c0_i32, %c0_i32_0 : i32, i32
  }
  func.func @transform_7(%arg0: i32) -> (i32, i32) {
    %c0_i32 = arith.constant 0 : i32
    %c0_i32_0 = arith.constant 0 : i32
    return %arg0, %c0_i32 : i32, i32
  }
}

</mosaic_0001>

<bundles_post_ra>
// kernel: tpu_custom_call.1
= control target key start
LH: loop header
LB: loop body
LE: loop exit
PB: predicated region body
PF: predicated region fallthrough
CT: control target
= control target key end

     0   :  { %12 = vsyncpa [#allocation3], 0  ;;  %s622_s0 = inlined_call_operand.hbm [shape: f32[8,64], index: 0, kind: input, shape index: {}]   ;;  %s623_s1 = inlined_call_operand.hbm [shape: bf16[64,128], index: 1, kind: input, shape index: {}]   ;;  %s624_s2 = inlined_call_operand.vmem [shape: f32[1,128], index: 2, kind: input, shape index: {}]   ;;  %s625_s3 = inlined_call_operand.vmem [shape: f32[1,128], index: 3, kind: input, shape index: {}]   ;;  %s626_s4 = inlined_call_operand.vmem [shape: f32[1,128], index: 4, kind: input, shape index: {}]   ;;  %s627_s5 = inlined_call_operand.hbm [shape: bf16[128,128], index: 5, kind: input, shape index: {}]   ;;  %s628_s6 = inlined_call_operand.vmem [shape: f32[1,128], index: 6, kind: input, shape index: {}]   ;;  %s629_s7 = inlined_call_operand.hbm [shape: f32[8,128], index: 7, kind: output, shape index: {}]  }
   0x1   :  { %13 = vsyncpa [#allocation6], 0 }
   0x2   :  { %14 = vsyncpa [#allocation4], 0  ;;  %s508_s24 = smov [#allocation5]   ;;  %s414_s28 = scalar_lea.hbm %s623_s1, 512 }
   0x3   :  { %s30_s25 = sshll.u32 %s508_s24, 4  ;;  %p415_p0 = scmp.ne.s32.totalorder %s623_s1, %s414_s28  ;;  %s31_s25 = int_to_ptr.vmem [resolvable:$true] %s30_s25 }
   0x4   :  { %p418_p1 = scmp.lt.u32.totalorder %s414_s28, %s623_s1 }
   0x6   :  { %p420_p2 = pnand %p418_p1, %p415_p0 }
   0x8   :  { %423 = shalt.err (!%p420_p2)
}
   0x9   :  { %s424_s10 = scalar_lea.vmem %s31_s25, 512  ;;  %p429_p4 = scmp.lt.s32.totalorder %s31_s25, %s31_s25 }
   0xa   :  { %p425_p3 = scmp.ne.s32.totalorder %s31_s25, %s424_s10  ;;  %p430_p5 = scmp.lt.s32.totalorder %s424_s10, %s424_s10 }
   0xc   :  { %p431_p6 = por %p430_p5, %p429_p4 }
   0xe   :  { %p432_p7 = pnand %p431_p6, %p425_p3 }
  0x10   :  { %435 = shalt.err (!%p432_p7)
}
  0x11   :  { %s509_s11 = smov 64   ;;  %s510_s12 = smov 4  }
  0x12   :  { %36 = dma.hbm_to_vmem [thread:$0]  %s623_s1, 512, %s31_s25, [#allocation6], %s509_s11, %s509_s11, %s510_s12  }
  0x13   :  { %s511_s15 = smov [#allocation2]   ;;  %s512_s17 = smov [#allocation7]  }
  0x14   :  { %s21_s16 = sshll.u32 %s511_s15, 4  ;;  %s48_s18 = sshll.u32 %s512_s17, 4  ;;  %s22_s16 = int_to_ptr.vmem [resolvable:$true] %s21_s16  ;;  %s49_s18 = int_to_ptr.vmem [resolvable:$true] %s48_s18 }
  0x15   :  { %s436_s21 = scalar_lea.hbm %s622_s0, 128 }
  0x16   :  { %p437_p8 = scmp.ne.s32.totalorder %s622_s0, %s436_s21  ;;  %p440_p9 = scmp.lt.u32.totalorder %s436_s21, %s622_s0 }
  0x18   :  { %p442_p10 = pnand %p440_p9, %p437_p8 }
  0x1a   :  { %445 = shalt.err (!%p442_p10)
}
  0x1b   :  { %s446_s1 = scalar_lea.vmem %s22_s16, 128  ;;  %p451_p12 = scmp.lt.s32.totalorder %s22_s16, %s22_s16 }
  0x1c   :  { %p447_p11 = scmp.ne.s32.totalorder %s22_s16, %s446_s1  ;;  %p452_p13 = scmp.lt.s32.totalorder %s446_s1, %s446_s1 }
  0x1e   :  { %p453_p0 = por %p452_p13, %p451_p12 }
  0x20   :  { %p454_p1 = pnand %p453_p0, %p447_p11 }
  0x22   :  { %457 = shalt.err (!%p454_p1)
}
  0x23   :  { %24 = dma.hbm_to_vmem [thread:$0]  %s622_s0, 128, %s22_s16, [#allocation3]  }
  0x24   :  { %s458_s30 = scalar_lea.hbm %s627_s5, 1024 }
  0x25   :  { %p459_p2 = scmp.ne.s32.totalorder %s627_s5, %s458_s30  ;;  %p462_p3 = scmp.lt.u32.totalorder %s458_s30, %s627_s5 }
  0x27   :  { %p464_p4 = pnand %p462_p3, %p459_p2 }
  0x29   :  { %467 = shalt.err (!%p464_p4)
}
  0x2a   :  { %s468_s14 = scalar_lea.vmem %s49_s18, 1024  ;;  %p473_p6 = scmp.lt.s32.totalorder %s49_s18, %s49_s18 }
  0x2b   :  { %p469_p5 = scmp.ne.s32.totalorder %s49_s18, %s468_s14  ;;  %p474_p7 = scmp.lt.s32.totalorder %s468_s14, %s468_s14 }
  0x2d   :  { %p475_p8 = por %p474_p7, %p473_p6 }
  0x2f   :  { %p476_p9 = pnand %p475_p8, %p469_p5 }
  0x31   :  { %479 = shalt.err (!%p476_p9)
}
  0x32   :  { %54 = dma.hbm_to_vmem [thread:$0]  %s627_s5, 1024, %s49_s18, [#allocation6], %s509_s11, %s509_s11, %s510_s12  }
  0x33   :  { %502 = dma.done.wait [#allocation3], 128  }
  0x34   :  { %503 = vsyncadd [#allocation3], 4294967168 }
  0x35   :  { %504 = dma.done.wait [#allocation6], 1536  }
  0x36   :  { %505 = vsyncadd [#allocation6], 4294965760  ;;  %v513_v0 = vmov 0.0   ;;  %vm514_vm0 = vmmov 0   ;;  %v396_v1 = vld [vmem:[#allocation5] sm:$0xff]   ;;  %v397_v2 = vld [vmem:[#allocation5 + $0x8] sm:$0xff]   ;;  %v293_v45 = vlaneseq }
  0x37   :  { %356 = vmatprep.subr.bf16.mxu0 %v513_v0  ;;  %364 = vmatprep.mubr.msk.bf16.mxu0 %vm514_vm0, %v513_v0  ;;  %v398_v3 = vld [vmem:[#allocation5 + $0x10] sm:$0xff]   ;;  %v399_v4 = vld [vmem:[#allocation5 + $0x18] sm:$0xff]   ;;  %vm108_vm1 = vcmask 523264   ;;  %v400_v13 = vld [vmem:[#allocation7] sm:$0xff]  }
  0x38   :  { %368 = vmatprep.subr.bf16.mxu1 %v513_v0  ;;  %384 = vmatprep.mubr.msk.bf16.mxu1 %vm514_vm0, %v513_v0  ;;  %v67_v5 = vld [vmem:[#allocation2] sm:$0xff]  ;;  %v401_v14 = vld [vmem:[#allocation7 + $0x8] sm:$0xff]   ;;  %v402_v19 = vld [vmem:[#allocation7 + $0x10] sm:$0xff]   ;;  %v294_v46 = vand.u32 127, %v293_v45 }
  0x39   :  { %357 = vmatpush3.bf16.msra.mxu0 %v396_v1  ;;  %v68_v6 = vpack.c.bf16 %v67_v5, %v67_v5  ;;  %v324_v7 = vld [vmem:[%s624_s2] ss:$0 sm:$0xff]  ;;  %369 = vmatpush3.bf16.msra.mxu1 %v400_v13  ;;  %v404_v21 = vld [vmem:[#allocation7 + $0x20] sm:$0xff]   ;;  %v405_v22 = vld [vmem:[#allocation7 + $0x28] sm:$0xff]  }
  0x3a   :  { %358 = vmatprep.subr.bf16.mxu0 %v513_v0  ;;  %370 = vmatprep.subr.bf16.mxu1 %v513_v0  ;;  %v403_v20 = vld [vmem:[#allocation7 + $0x18] sm:$0xff]   ;;  %v406_v23 = vld [vmem:[#allocation7 + $0x30] sm:$0xff]   ;;  %vm295_vm2 = vcmp.ge.s32.totalorder %v294_v46, 32  ;;  %vm296_vm3 = vcmp.lt.s32.totalorder %v294_v46, 64 }
  0x3b   :  { %v407_v24 = vld [vmem:[#allocation7 + $0x38] sm:$0xff]   ;;  %vm297_vm4 = vmand %vm295_vm2, %vm296_vm3 }
  0x3c   :  { %v330_v29 = vld [vmem:[%s625_s3] ss:$0 sm:$0xff]  ;;  %s515_s3 = smov [#allocation8]  }
  0x3d   :  { %359 = vmatpush3.bf16.msra.mxu0 %v397_v2  ;;  %371 = vmatpush3.bf16.msra.mxu1 %v401_v14  ;;  %v331_v31 = vld [vmem:[%s626_s4] ss:$0 sm:$0xff]  ;;  %s314_s4 = sshll.u32 %s515_s3, 4  ;;  %s315_s4 = int_to_ptr.vmem [resolvable:$true] %s314_s4 }
  0x3e   :  { %360 = vmatprep.subr.bf16.mxu0 %v513_v0  ;;  %372 = vmatprep.subr.bf16.mxu1 %v513_v0  ;;  %v332_v36 = vld [vmem:[%s628_s6] ss:$0 sm:$0xff]  ;;  %s480_s6 = scalar_lea.vmem %s315_s4, 128  ;;  %p485_p11 = scmp.lt.s32.totalorder %s315_s4, %s315_s4 }
  0x3f   :  { %p481_p10 = scmp.ne.s32.totalorder %s315_s4, %s480_s6  ;;  %p486_p12 = scmp.lt.s32.totalorder %s480_s6, %s480_s6 }
  0x41   :  { %361 = vmatpush3.bf16.msra.mxu0 %v398_v3  ;;  %373 = vmatpush3.bf16.msra.mxu1 %v402_v19  ;;  %p487_p13 = por %p486_p12, %p485_p11 }
  0x42   :  { %362 = vmatprep.subr.bf16.mxu0 %v513_v0  ;;  %374 = vmatprep.subr.bf16.mxu1 %v513_v0 }
  0x43   :  { %p488_p0 = pnand %p487_p13, %p481_p10 }
  0x45   :  { %363 = vmatpush3.bf16.msra.mxu0 %v399_v4  ;;  %375 = vmatpush3.bf16.msra.mxu1 %v403_v20 }
  0x46   :  { %376 = vmatprep.subr.bf16.mxu1 %v513_v0 }
  0x48   :  { %365 = vmatmul.mubr.msk.bf16.vlgmr.msra.gmra.mrb[0].mxu0 %vm108_vm1, %v68_v6 }
  0x49   :  { %377 = vmatpush3.bf16.msra.mxu1 %v404_v21 }
  0x4a   :  { %378 = vmatprep.subr.bf16.mxu1 %v513_v0 }
  0x4d   :  { %379 = vmatpush3.bf16.msra.mxu1 %v405_v22 }
  0x4e   :  { %380 = vmatprep.subr.bf16.mxu1 %v513_v0 }
  0x51   :  { %381 = vmatpush3.bf16.msra.mxu1 %v406_v23 }
  0x52   :  { %382 = vmatprep.subr.bf16.mxu1 %v513_v0 }
  0x55   :  { %383 = vmatpush3.bf16.msra.mxu1 %v407_v24 }
 0x11b   :  { %v146_v8 = vpop.f32.mrb[0].mxu0 }
 0x11c   :  { %v147_v9 = vadd.f32 %v324_v7, %v146_v8  ;;  %v366_v10 = vpop.f32.mrb[1].mxu0 }
 0x11d   :  { %v149_v11 = vpop.f32.mrb[2].mxu0 }
 0x11e   :  { %152 = vadd.xlane.f32.xlu0 %v147_v9  ;;  %v367_v12 = vpop.f32.mrb[3].mxu0 }
 0x1ab   :  { %v153_v15 = vpop.xlane.xlu0 %152 }
 0x1ac   :  { %v155_v16 = vmul.f32 0.0078125, %v153_v15 }
 0x1ae   :  { %v156_v17 = vsub.f32 %v147_v9, %v155_v16 }
 0x1b0   :  { %v157_v18 = vmul.f32 %v156_v17, %v156_v17 }
 0x1b2   :  { %158 = vadd.xlane.f32.xlu0 %v157_v18 }
 0x23f   :  { %v159_v25 = vpop.xlane.xlu0 %158 }
 0x240   :  { %v160_v26 = vmul.f32 0.0078125, %v159_v25 }
 0x242   :  { %v161_v27 = vadd.f32 1e-05, %v160_v26 }
 0x244   :  { %408 = vrsqrt.f32 %v161_v27 }
 0x24e   :  { %v409_v28 = vpop.eup %408 }
 0x24f   :  { %v163_v30 = vmul.f32 %v409_v28, %v156_v17 }
 0x251   :  { %v171_v32 = vmul.f32 %v330_v29, %v163_v30 }
 0x253   :  { %v179_v33 = vadd.f32 %v331_v31, %v171_v32 }
 0x255   :  { %v180_v34 = vmax.f32 %v179_v33, 0.0 }
 0x257   :  { %v181_v35 = vpack.c.bf16 %v180_v34, %v180_v34 }
 0x259   :  { %385 = vmatmul.mubr.bf16.vlgmr.msra.gmra.mrb[0].mxu1 %v181_v35 }
 0x32c   :  { %v287_v37 = vpop.f32.mrb[0].mxu1 }
 0x32d   :  { %v288_v38 = vadd.f32 %v332_v36, %v287_v37  ;;  %v386_v39 = vpop.f32.mrb[1].mxu1 }
 0x32e   :  { %v290_v40 = vpop.f32.mrb[2].mxu1 }
 0x32f   :  { %v341_v41 = vmul.f32 -1.442695, %v288_v38  ;;  %v387_v42 = vpop.f32.mrb[3].mxu1 }
 0x331   :  { %410 = vpow2.f32 %v341_v41 }
 0x33b   :  { %v411_v43 = vpop.eup %410 }
 0x33c   :  { %v301_v44 = vadd.f32 1.0, %v411_v43 }
 0x33e   :  { %412 = vrcp.f32 %v301_v44 }
 0x348   :  { %v413_v47 = vpop.eup %412 }
 0x349   :  { %v304_v48 = vmul.f32 9.9999, %v413_v47 }
 0x34b   :  { %v305_v49 = vadd.f32 0.0001, %v304_v48 }
 0x34d   :  { %v306_v50 = vsel %vm297_vm4, %v305_v49, %v288_v38 }
 0x34e   :  { %307 = vst [vmem:[#allocation8] sm:$0xff] %v306_v50 }
 0x34f   :  { %491 = shalt.err (!%p488_p0)
}
 0x350   :  { %s492_s22 = scalar_lea.hbm %s629_s7, 128 }
 0x351   :  { %p493_p1 = scmp.ne.s32.totalorder %s629_s7, %s492_s22  ;;  %p496_p2 = scmp.lt.u32.totalorder %s492_s22, %s629_s7 }
 0x353   :  { %p498_p3 = pnand %p496_p2, %p493_p1 }
 0x355   :  { %501 = shalt.err (!%p498_p3)
}
 0x356   :  { %317 = dma.vmem_to_hbm [thread:$0]  %s315_s4, 128, %s629_s7, [#allocation4]  }
 0x357   :  { %506 = dma.done.wait [#allocation4], 128  }
 0x358   :  { %507 = vsyncadd [#allocation4], 4294967168 }
 0x359   :  { %321 = vsyncpa [#allocation3], 1 }
 0x35a   :  { %322 = vsyncpa [#allocation6], 1 }
 0x35b   :  { %323 = vsyncpa [#allocation4], 1 }

</bundles_post_ra>
